<compile_context>
chip_gen: v5e
topology: v5e:2x2
jax: 0.10.0
libtpu: 0.0.40
codegen_flags: <defaults>
</compile_context>

<pallas_src>
import jax
import jax.numpy as jnp
from jax.experimental import pallas as pl
from jax.experimental.pallas import tpu as pltpu


def bsp_cdan_kernel(feat_ref, w1_ref, b1_ref, w2_ref, b2_ref, out_ref, outc_ref):
    # bottleneck: Linear(F, 256) + ReLU (+ Dropout(0.5), eval-mode identity)
    fb = feat_ref[...].astype(jnp.bfloat16)                    # cast in-kernel
    h = jnp.dot(fb, w1_ref[...], preferred_element_type=jnp.float32)
    h = jnp.maximum(h + b1_ref[...], jnp.float32(0.0))         # f32 bias + ReLU

    hb = h.astype(jnp.bfloat16)           # single bf16 cast, reused twice
    out_ref[...] = hb                     # bf16 writeback of the bottleneck output

    # classifier: Linear(256, C) -- narrow C-lane masked store, no padded slab
    c = jnp.dot(hb, w2_ref[...], preferred_element_type=jnp.float32)
    outc_ref[...] = (c + b2_ref[...]).astype(outc_ref.dtype)


def bsp_cdan_forward(feature, w1, b1, w2, b2, *, tb=1024):
    """feature: [B, F] f32; w1: [F, H]; b1: [1, H]; w2: [H, C]; b2: [1, C]."""
    B, F = feature.shape
    H = w1.shape[1]
    C = w2.shape[1]

    # bf16 matmul operands for the MXU; f32 biases for the accumulation path.
    w1_bf = w1.astype(jnp.bfloat16)
    w2_bf = w2.astype(jnp.bfloat16)
    b1_f32 = b1.astype(jnp.float32)
    b2_f32 = b2.astype(jnp.float32)

    # --- batch tile: sublane-aligned; large B splits into >=2 tiles (v7x) ------
    half = ((pl.cdiv(B, 2) + 7) // 8) * 8           # ~B/2, rounded up to 8
    TB = min(tb, max(8, half))
    TB = ((TB + 7) // 8) * 8                        # sublane (8) alignment
    if TB >= B:
        TB = B                                      # single full-batch tile (legal)
    grid = (pl.cdiv(B, TB),)                        # ragged last block handled by Pallas

    # --- VMEM budget: streamed refs double-buffered, resident weights counted once
    vmem_bytes = (2 * TB * F * 4                    # feat tile (f32), double-buffered
                  + F * H * 2 + H * 4               # W1 (bf16) + b1 (f32), resident
                  + H * C * 2 + C * 4               # W2 (bf16) + b2 (f32), resident
                  + 2 * TB * H * 2                  # out tile (bf16), double-buffered
                  + 2 * TB * C * 4                  # outC tile (f32), double-buffered
                  + 2 * TB * H * 4)                 # headroom: in-kernel f32 h / casts
    vmem_limit = int(min(max(vmem_bytes * 2 + (4 << 20), 16 << 20), 48 << 20))

    cost = pl.CostEstimate(
        flops=2 * B * F * H + 2 * B * H * C,
        transcendentals=0,
        bytes_accessed=(B * F * 4 + F * H * 2 + H * C * 2
                        + B * H * 2 + B * C * 4),
    )

    out, outc = pl.pallas_call(
        bsp_cdan_kernel,
        out_shape=(
            jax.ShapeDtypeStruct((B, H), jnp.bfloat16),    # bottleneck `out` (bf16)
            jax.ShapeDtypeStruct((B, C), jnp.float32),     # classifier `outC`
        ),
        grid=grid,
        in_specs=[
            pl.BlockSpec((TB, F), lambda i: (i, 0)),       # feat tile, streamed
            pl.BlockSpec((F, H), lambda i: (0, 0)),        # W1, VMEM-resident
            pl.BlockSpec((1, H), lambda i: (0, 0)),        # b1
            pl.BlockSpec((H, C), lambda i: (0, 0)),        # W2 (unpadded, C lanes)
            pl.BlockSpec((1, C), lambda i: (0, 0)),        # b2
        ],
        out_specs=(
            pl.BlockSpec((TB, H), lambda i: (i, 0)),
            pl.BlockSpec((TB, C), lambda i: (i, 0)),
        ),
        compiler_params=pltpu.CompilerParams(
            dimension_semantics=("parallel",),             # megacore split on v7x
            vmem_limit_bytes=vmem_limit,
        ),
        cost_estimate=cost,
    )(feature.astype(jnp.float32), w1_bf, b1_f32, w2_bf, b2_f32)

    return out, outc


def xavier_normal(key, fan_out, fan_in):
    # matches torch.nn.init.xavier_normal_ on a [fan_out, fan_in] weight
    std = (2.0 / (fan_in + fan_out)) ** 0.5
    return std * jax.random.normal(key, (fan_out, fan_in), dtype=jnp.float32)


def _ref_forward(feature, w1, b1, w2, b2):
    # Pure-JAX reference mimicking the kernel's bf16-operand / f32-accum math.
    fb = feature.astype(jnp.bfloat16)
    h = jnp.maximum(
        jnp.dot(fb, w1.astype(jnp.bfloat16), preferred_element_type=jnp.float32) + b1,
        0.0)
    hb = h.astype(jnp.bfloat16)
    c = jnp.dot(hb, w2.astype(jnp.bfloat16), preferred_element_type=jnp.float32) + b2
    return hb, c


def _check(out, outc, feature, w1, b1, w2, b2, B, H, C):
    ref_out, ref_outc = _ref_forward(feature, w1, b1, w2, b2)
    assert out.shape == (B, H) and out.dtype == jnp.bfloat16
    assert outc.shape == (B, C) and outc.dtype == jnp.float32
    assert jnp.allclose(out.astype(jnp.float32), ref_out.astype(jnp.float32),
                        atol=2e-2, rtol=2e-2)
    assert jnp.allclose(outc, ref_outc, atol=2e-2, rtol=2e-2)


if __name__ == "__main__":
    key = jax.random.PRNGKey(0)
    k_f1, k_f2, k_f3, k_w1, k_w2 = jax.random.split(key, 5)

    num_features = 32  # feature extractor output dim
    H = 256            # bottleneck width
    C = 4              # num classes

    # Deterministic parameter init (Xavier-normal weights, zero biases),
    # stored pre-transposed for the [B,F] @ [F,H] kernel layout.
    w1 = xavier_normal(k_w1, H, num_features).T          # [F, H]
    b1 = jnp.zeros((1, H), dtype=jnp.float32)
    w2 = xavier_normal(k_w2, C, H).T                     # [H, C]
    b2 = jnp.zeros((1, C), dtype=jnp.float32)

    # --- case 1: small batch, single full-batch tile ---
    B = 8
    feature = jax.random.normal(k_f1, (B, num_features), dtype=jnp.float32)
    out, outc = bsp_cdan_forward(feature, w1, b1, w2, b2)
    jax.block_until_ready((out, outc))
    _check(out, outc, feature, w1, b1, w2, b2, B, H, C)

    # --- case 2: multi-tile grid with a ragged last block (B=20, TB=8 -> 3 tiles) ---
    B2 = 20
    feature2 = jax.random.normal(k_f2, (B2, num_features), dtype=jnp.float32)
    out2, outc2 = bsp_cdan_forward(feature2, w1, b1, w2, b2, tb=8)
    jax.block_until_ready((out2, outc2))
    _check(out2, outc2, feature2, w1, b1, w2, b2, B2, H, C)

    # --- case 3: non-multiple-of-8 tb request gets rounded up (tb=12 -> TB=16) ---
    B3 = 100
    feature3 = jax.random.normal(k_f3, (B3, num_features), dtype=jnp.float32)
    out3, outc3 = bsp_cdan_forward(feature3, w1, b1, w2, b2, tb=12)
    jax.block_until_ready((out3, outc3))
    _check(out3, outc3, feature3, w1, b1, w2, b2, B3, H, C)

    print("KERNEL_OK")
</pallas_src>

<mosaic_0001>
module attributes {stable_mosaic.version = 11 : i64} {
  func.func @bsp_cdan_kernel(%arg0: i32, %arg1: memref<8x32xf32, #tpu.memory_space<vmem>>, %arg2: memref<32x256xbf16, #tpu.memory_space<vmem>>, %arg3: memref<1x256xf32, #tpu.memory_space<vmem>>, %arg4: memref<256x4xbf16, #tpu.memory_space<vmem>>, %arg5: memref<1x4xf32, #tpu.memory_space<vmem>>, %arg6: memref<8x256xbf16, #tpu.memory_space<vmem>>, %arg7: memref<8x4xf32, #tpu.memory_space<vmem>>) attributes {dimension_semantics = [#tpu.dimension_semantics<parallel>], iteration_bounds = array<i64: 1>, scalar_prefetch = 0 : i64, scratch_operands = 0 : i64, tpu.core_type = #tpu.core_type<tc>, window_params = [{transform_indices = @transform_0, window_bounds = array<i64: 8, 32>}, {pipeline_mode = #tpu.pipeline_mode<synchronous>, transform_indices = @transform_1, window_bounds = array<i64: 32, 256>}, {pipeline_mode = #tpu.pipeline_mode<synchronous>, transform_indices = @transform_2, window_bounds = array<i64: 1, 256>}, {pipeline_mode = #tpu.pipeline_mode<synchronous>, transform_indices = @transform_3, window_bounds = array<i64: 256, 4>}, {pipeline_mode = #tpu.pipeline_mode<synchronous>, transform_indices = @transform_4, window_bounds = array<i64: 1, 4>}, {transform_indices = @transform_5, window_bounds = array<i64: 8, 256>}, {transform_indices = @transform_6, window_bounds = array<i64: 8, 4>}]} {
    %c0 = arith.constant 0 : index
    %c0_0 = arith.constant 0 : index
    %0 = vector.load %arg1[%c0, %c0_0] : memref<8x32xf32, #tpu.memory_space<vmem>>, vector<8x32xf32>
    %1 = arith.truncf %0 : vector<8x32xf32> to vector<8x32xbf16>
    %c0_1 = arith.constant 0 : index
    %c0_2 = arith.constant 0 : index
    %2 = vector.load %arg2[%c0_1, %c0_2] : memref<32x256xbf16, #tpu.memory_space<vmem>>, vector<32x256xbf16>
    %cst = arith.constant dense<0.000000e+00> : vector<8x256xf32>
    %3 = tpu.matmul %1, %2, %cst {dimension_numbers = #tpu.dot_dimension_numbers<[1], [0], [0], [1], [0, 0, 1, 1], [], []>} : vector<8x32xbf16>, vector<32x256xbf16>, vector<8x256xf32> -> vector<8x256xf32>
    %c0_3 = arith.constant 0 : index
    %c0_4 = arith.constant 0 : index
    %4 = vector.load %arg3[%c0_3, %c0_4] : memref<1x256xf32, #tpu.memory_space<vmem>>, vector<1x256xf32>
    %5 = vector.broadcast %4 : vector<1x256xf32> to vector<8x256xf32>
    %6 = arith.addf %3, %5 : vector<8x256xf32>
    %cst_5 = arith.constant 0.000000e+00 : f32
    %7 = vector.broadcast %cst_5 : f32 to vector<8x256xf32>
    %8 = arith.maximumf %6, %7 : vector<8x256xf32>
    %9 = arith.truncf %8 : vector<8x256xf32> to vector<8x256xbf16>
    %c0_6 = arith.constant 0 : index
    %c0_7 = arith.constant 0 : index
    %10 = vector.load %arg6[%c0_6, %c0_7] : memref<8x256xbf16, #tpu.memory_space<vmem>>, vector<8x256xbf16>
    tpu.vector_store %arg6[%c0_6, %c0_7], %9 {strides = array<i32>} : memref<8x256xbf16, #tpu.memory_space<vmem>>, vector<8x256xbf16>,
    %c0_8 = arith.constant 0 : index
    %c0_9 = arith.constant 0 : index
    %11 = vector.load %arg4[%c0_8, %c0_9] : memref<256x4xbf16, #tpu.memory_space<vmem>>, vector<256x4xbf16>
    %cst_10 = arith.constant dense<0.000000e+00> : vector<8x4xf32>
    %12 = tpu.matmul %9, %11, %cst_10 {dimension_numbers = #tpu.dot_dimension_numbers<[1], [0], [0], [1], [0, 0, 1, 1], [], []>} : vector<8x256xbf16>, vector<256x4xbf16>, vector<8x4xf32> -> vector<8x4xf32>
    %c0_11 = arith.constant 0 : index
    %c0_12 = arith.constant 0 : index
    %13 = vector.load %arg5[%c0_11, %c0_12] : memref<1x4xf32, #tpu.memory_space<vmem>>, vector<1x4xf32>
    %14 = vector.broadcast %13 : vector<1x4xf32> to vector<8x4xf32>
    %15 = arith.addf %12, %14 : vector<8x4xf32>
    %c0_13 = arith.constant 0 : index
    %c0_14 = arith.constant 0 : index
    %16 = vector.load %arg7[%c0_13, %c0_14] : memref<8x4xf32, #tpu.memory_space<vmem>>, vector<8x4xf32>
    tpu.vector_store %arg7[%c0_13, %c0_14], %15 {strides = array<i32>} : memref<8x4xf32, #tpu.memory_space<vmem>>, vector<8x4xf32>,
    return
  }
  func.func @transform_0(%arg0: i32) -> (i32, i32) {
    %c0_i32 = arith.constant 0 : i32
    %c0_i32_0 = arith.constant 0 : i32
    return %arg0, %c0_i32 : i32, i32
  }
  func.func @transform_1(%arg0: i32) -> (i32, i32) {
    %c0_i32 = arith.constant 0 : i32
    %c0_i32_0 = arith.constant 0 : i32
    %c0_i32_1 = arith.constant 0 : i32
    return %c0_i32, %c0_i32_0 : i32, i32
  }
  func.func @transform_2(%arg0: i32) -> (i32, i32) {
    %c0_i32 = arith.constant 0 : i32
    %c0_i32_0 = arith.constant 0 : i32
    %c0_i32_1 = arith.constant 0 : i32
    return %c0_i32, %c0_i32_0 : i32, i32
  }
  func.func @transform_3(%arg0: i32) -> (i32, i32) {
    %c0_i32 = arith.constant 0 : i32
    %c0_i32_0 = arith.constant 0 : i32
    %c0_i32_1 = arith.constant 0 : i32
    return %c0_i32, %c0_i32_0 : i32, i32
  }
  func.func @transform_4(%arg0: i32) -> (i32, i32) {
    %c0_i32 = arith.constant 0 : i32
    %c0_i32_0 = arith.constant 0 : i32
    %c0_i32_1 = arith.constant 0 : i32
    return %c0_i32, %c0_i32_0 : i32, i32
  }
  func.func @transform_5(%arg0: i32) -> (i32, i32) {
    %c0_i32 = arith.constant 0 : i32
    %c0_i32_0 = arith.constant 0 : i32
    return %arg0, %c0_i32 : i32, i32
  }
  func.func @transform_6(%arg0: i32) -> (i32, i32) {
    %c0_i32 = arith.constant 0 : i32
    %c0_i32_0 = arith.constant 0 : i32
    return %arg0, %c0_i32 : i32, i32
  }
}

</mosaic_0001>

<bundles_post_ra>
// kernel: tpu_custom_call.1
= control target key start
LH: loop header
LB: loop body
LE: loop exit
PB: predicated region body
PF: predicated region fallthrough
CT: control target
= control target key end

     0   :  { %vm56_vm0 = vcmask 261120   ;;  %s530_s0 = inlined_call_operand.vmem [shape: f32[8,32], index: 0, kind: input, shape index: {}]   ;;  %s531_s1 = inlined_call_operand.vmem [shape: bf16[32,256], index: 1, kind: input, shape index: {}]   ;;  %s532_s2 = inlined_call_operand.vmem [shape: f32[1,256], index: 2, kind: input, shape index: {}]   ;;  %s533_s3 = inlined_call_operand.vmem [shape: bf16[256,4], index: 3, kind: input, shape index: {}]   ;;  %s534_s4 = inlined_call_operand.vmem [shape: f32[1,4], index: 4, kind: input, shape index: {}]   ;;  %s535_s5 = inlined_call_operand.hbm [shape: bf16[8,256], index: 5, kind: output, shape index: {0}]   ;;  %s536_s6 = inlined_call_operand.vmem [shape: f32[8,4], index: 6, kind: output, shape index: {1}]  }
   0x1   :  { %v287_v0 = vld [vmem:[%s531_s1 + $0x10] sm:$0xf]  ;;  %v362_v1 = vld [vmem:[%s531_s1 + $0x14] sm:$0xf0]  ;;  %v361_v2 = vld [vmem:[%s531_s1 + $0x14] sm:$0xf] }
   0x2   :  { %v288_v3 = vor.u32 %v362_v1, %v287_v0  ;;  %v289_v4 = vld [vmem:[%s531_s1 + $0x18] sm:$0xf0]  ;;  %v279_v5 = vld [vmem:[%s531_s1] sm:$0xf]  ;;  %v360_v6 = vld [vmem:[%s531_s1 + $0x4] sm:$0xf0] }
   0x3   :  { %v292_v7 = vor.u32 %v361_v2, %v289_v4  ;;  %v359_v8 = vld [vmem:[%s531_s1 + $0x4] sm:$0xf]  ;;  %v281_v9 = vld [vmem:[%s531_s1 + $0x8] sm:$0xf0]  ;;  %v280_v10 = vor.u32 %v360_v6, %v279_v5  ;;  %v370_v12 = vld [vmem:[%s533_s3 + $0x38] sm:$0xff] }
   0x4   :  { %66 = vmatpush.bf16.msra.mxu0 %v288_v3  ;;  %v24_v11 = vld [vmem:[%s530_s0] sm:$0xff]  ;;  %v378_v13 = vld [vmem:[%s533_s3 + $0x78] sm:$0xff]  ;;  %v284_v14 = vor.u32 %v359_v8, %v281_v9  ;;  %229 = vmatpush.bf16.msra.mxu2 %v370_v12  ;;  %v369_v15 = vld [vmem:[%s533_s3 + $0x30] sm:$0xff] }
   0x5   :  { %79 = vmatpush.bf16.msra.mxu1 %v292_v7  ;;  %242 = vmatpush.bf16.msra.mxu3 %v378_v13  ;;  %v377_v16 = vld [vmem:[%s533_s3 + $0x70] sm:$0xff]  ;;  %v25_v17 = vpack.c.bf16 %v24_v11, %v24_v11 }
   0x8   :  { %67 = vmatpush.bf16.msra.mxu0 %v280_v10 }
   0x9   :  { %12 = vsyncpa [#allocation3], 0  ;;  %80 = vmatpush.bf16.msra.mxu1 %v284_v14  ;;  %230 = vmatpush.bf16.msra.mxu2 %v369_v15  ;;  %v368_v18 = vld [vmem:[%s533_s3 + $0x28] sm:$0xff]  ;;  %v367_v20 = vld [vmem:[%s533_s3 + $0x20] sm:$0xff]  ;;  %s264_s23 = sshll.u32 %s535_s5, 4  ;;  %vm255_vm1 = vcmask 31744   ;;  %s265_s23 = int_to_ptr.hbm [resolvable:$true] %s264_s23 }
   0xa   :  { %243 = vmatpush.bf16.msra.mxu3 %v377_v16  ;;  %v376_v19 = vld [vmem:[%s533_s3 + $0x68] sm:$0xff]  ;;  %v375_v21 = vld [vmem:[%s533_s3 + $0x60] sm:$0xff]  ;;  %v366_v22 = vld [vmem:[%s533_s3 + $0x18] sm:$0xff] }
   0xb   :  { %293 = vmatmul.msk.bf16.vlgmr.msra.gmra.mxu0 %vm56_vm0, %v25_v17  ;;  %v374_v23 = vld [vmem:[%s533_s3 + $0x58] sm:$0xff]  ;;  %v365_v24 = vld [vmem:[%s533_s3 + $0x10] sm:$0xff]  ;;  %v364_v26 = vld [vmem:[%s533_s3 + $0x8] sm:$0xff] }
   0xc   :  { %294 = vmatmul.msk.bf16.vlgmr.msra.gmra.mxu1 %vm56_vm0, %v25_v17  ;;  %v373_v25 = vld [vmem:[%s533_s3 + $0x50] sm:$0xff]  ;;  %v372_v27 = vld [vmem:[%s533_s3 + $0x48] sm:$0xff]  ;;  %v363_v28 = vld [vmem:[%s533_s3] sm:$0xff] }
   0xd   :  { %231 = vmatpush.bf16.msra.mxu2 %v368_v18  ;;  %v371_v29 = vld [vmem:[%s533_s3 + $0x40] sm:$0xff]  ;;  %s407_s3 = smov [#allocation2]  }
   0xe   :  { %244 = vmatpush.bf16.msra.mxu3 %v376_v19  ;;  %v30_v30 = vld [vmem:[%s532_s2] sm:$0x3]  ;;  %s262_s2 = sshll.u32 %s407_s3, 4  ;;  %s263_s2 = int_to_ptr.vmem [resolvable:$true] %s262_s2 }
   0xf   :  { %v32_v31 = vperm.slane %v30_v30, 0  ;;  %v33_v32 = vperm.slane %v30_v30, 1  ;;  %v380_v46 = vld [vmem:[%s534_s4] ss:$0 sm:$0xff] }
  0x11   :  { %232 = vmatpush.bf16.msra.mxu2 %v367_v20 }
  0x12   :  { %245 = vmatpush.bf16.msra.mxu3 %v375_v21 }
  0x15   :  { %233 = vmatpush.bf16.msra.mxu2 %v366_v22 }
  0x16   :  { %246 = vmatpush.bf16.msra.mxu3 %v374_v23 }
  0x19   :  { %234 = vmatpush.bf16.msra.mxu2 %v365_v24 }
  0x1a   :  { %247 = vmatpush.bf16.msra.mxu3 %v373_v25 }
  0x1d   :  { %235 = vmatpush.bf16.msra.mxu2 %v364_v26 }
  0x1e   :  { %248 = vmatpush.bf16.msra.mxu3 %v372_v27 }
  0x21   :  { %236 = vmatpush.bf16.msra.mxu2 %v363_v28 }
  0x22   :  { %249 = vmatpush.bf16.msra.mxu3 %v371_v29 }
  0x88   :  { %v69_v33 = vpop.f32.mrf.mxu0 }
  0x89   :  { %v70_v34 = vadd.f32 %v69_v33, %v32_v31  ;;  %v82_v35 = vpop.f32.mrf.mxu1 }
  0x8a   :  { %v83_v36 = vadd.f32 %v82_v35, %v33_v32 }
  0x8b   :  { %v86_v37 = vmax.f32 %v70_v34, 0.0 }
  0x8c   :  { %v87_v38 = vmax.f32 %v83_v36, 0.0 }
  0x8e   :  { %v88_v39 = vpack.c.bf16 %v87_v38, %v86_v37 }
  0x90   :  { %89 = vst [vmem:[#allocation2] sm:$0xff] %v88_v39  ;;  %v71_v40 = vpop.f32.mrf.mxu0  ;;  %v127_v41 = vunpack.c.l.b16 %v88_v39  ;;  %v128_v42 = vunpack.c.h.b16 %v88_v39 }
  0x91   :  { %v84_v43 = vpop.f32.mrf.mxu1  ;;  %267 = dma.vmem_to_hbm [thread:$0]  %s263_s2, 128, %s265_s23, [#allocation3]  }
  0x92   :  { %v129_v44 = vpack.c.b16 %v127_v41, %v127_v41  ;;  %v130_v45 = vpack.c.b16 %v128_v42, %v128_v42 }
  0x94   :  { %237 = vmatmul.bf16.vlgmr.msra.gmra.mxu2 %v129_v44  ;;  %250 = vmatmul.bf16.vlgmr.msra.gmra.mxu3 %v130_v45 }
 0x117   :  { %v238_v47 = vpop.f32.mrf.mxu2  ;;  %v251_v48 = vpop.f32.mrf.mxu3 }
 0x118   :  { %v239_v49 = vadd.f32 %v380_v46, %v238_v47 }
 0x11a   :  { %v252_v50 = vadd.f32 %v251_v48, %v239_v49 }
 0x11c   :  { %256 = vst.msk [vmem:[%s536_s6] sm:$0xff] %vm255_vm1, %v252_v50 }
 0x11f   :  { %v240_v51 = vpop.f32.mrf.mxu2  ;;  %v253_v52 = vpop.f32.mrf.mxu3 }
 0x120   :  { %405 = dma.done.wait [#allocation3], 128  }
 0x121   :  { %406 = vsyncadd [#allocation3], 4294967168 }
 0x122   :  { %276 = vsyncpa [#allocation3], 1 }

</bundles_post_ra>
